<compile_context>
chip_gen: v7x
topology: tpu7x:2x2x1
jax: 0.10.0
libtpu: 0.0.40
codegen_flags: <defaults>
</compile_context>

<pallas_src>
import functools

import jax
import jax.numpy as jnp
import numpy as np
from jax.experimental import pallas as pl
from jax.experimental.pallas import tpu as pltpu

_PAD = 6  # pad_len=5 (F.pad in forward) + 1 (Conv1d padding=1)


def _imputer_kernel(x_ref, mask_ref, wc1_ref, bc1_ref, wc2_ref, bc2_ref,
                    lw1_ref, lw2_ref, lb_ref, out_ref, *, c1, k1, p1, c2, k2, p2):
    """One grid step == one batch tile of TB samples. All arrays are 2-D, lane-dense.

    x_ref    : (TB, S*F)     bf16  input, flattened (s, f) -> lane
    mask_ref : (TB, S*F)     bf16  validity mask, already broadcast over F
    wcN_ref  : (S*F, LN*CN)  bf16  conv-as-matmul weight (taps + zero-pad folded in)
    bcN_ref  : (1, LN*CN)    f32   conv bias, tiled over the length dim
    lwN_ref  : (PN*CN, S*F)  bf16  output Linear slice, column-replicated over S
    lb_ref   : (1, S*F)      f32   Linear bias, replicated over S
    out_ref  : (TB, S*F)     f32
    """
    xb = x_ref[...]

    def branch(wc_ref, bc_ref, c, k, p):
        # Conv1d as a single MXU matmul: K taps and the length-6 zero padding are
        # folded into the banded (S*F, L*C) weight built once in the wrapper.
        h = jnp.dot(xb, wc_ref[...], preferred_element_type=jnp.float32)
        h = jnp.maximum(h + bc_ref[...], 0.0)                  # bias + ReLU, (TB, L*C)
        # MaxPool1d(k, stride=1, padding=1) in the flat (l, c) lane layout.
        # ReLU output >= 0, so zero padding is exactly equivalent to -inf padding.
        zpad = jnp.zeros((h.shape[0], c), jnp.float32)
        hp = jnp.concatenate([zpad, h, zpad], axis=1)          # (TB, (L+2)*C)
        pooled = hp[:, 0:p * c]
        for j in range(1, k):
            pooled = jnp.maximum(pooled, hp[:, j * c:j * c + p * c])
        return pooled                                          # (TB, P*C), index = l*C + c

    f1 = branch(wc1_ref, bc1_ref, c1, k1, p1).astype(lw1_ref.dtype)
    f2 = branch(wc2_ref, bc2_ref, c2, k2, p2).astype(lw2_ref.dtype)

    # output_layer(flatten(cat(...))): two MXU matmuls with K = P*C, N = S*F.
    y = (jnp.dot(f1, lw1_ref[...], preferred_element_type=jnp.float32)
         + jnp.dot(f2, lw2_ref[...], preferred_element_type=jnp.float32)
         + lb_ref[...])                                        # (TB, S*F) f32
    out_ref[...] = mask_ref[...] * y                           # lane-dense store


def _band_conv_matrix(w, seq_len, out_len):
    """Fold Conv1d (incl. the forward's length-6 zero padding) into a matmul weight.

    w: (C, F, k).  Returns Wc: (S*F, out_len*C) with
        Wc[s*F + f, l*C + c] = w[c, f, s + _PAD - l]  if 0 <= s + _PAD - l < k else 0
    so that (X.reshape(B, S*F) @ Wc)[b, l*C + c] == Conv1d(pad(X))[b, c, l].
    """
    C, F, k = w.shape
    s_idx = np.arange(seq_len)[:, None]
    l_idx = np.arange(out_len)[None, :]
    kk = s_idx + _PAD - l_idx                                  # (S, L)
    valid = ((kk >= 0) & (kk < k)).astype(np.float32)
    kk = np.clip(kk, 0, k - 1)
    wt = jnp.transpose(w, (2, 1, 0))                           # (k, F, C)
    g = wt[kk] * jnp.asarray(valid)[:, :, None, None]          # (S, L, F, C)
    g = jnp.transpose(g, (0, 2, 1, 3))                         # (S, F, L, C)
    return g.reshape(seq_len * F, out_len * C)


def _round_up(x, m):
    return ((x + m - 1) // m) * m


def timeseries_imputer_cnn(X, mask, params, *, batch_tile=128):
    """X: (B, S, F) float, mask: (B, S) bool/float. Returns ((B, S, F) f32, None)."""
    B, S, F = X.shape
    SF = S * F

    w1, b1 = params["w1"], params["b1"]           # (C1, F, k1), (C1,)
    w2, b2 = params["w2"], params["b2"]           # (C2, F, k2), (C2,)
    lw, lb = params["lw"], params["lb"]           # (F, D_flat), (F,)
    c1, k1 = w1.shape[0], w1.shape[2]
    c2, k2 = w2.shape[0], w2.shape[2]
    L1 = S + 2 * _PAD - k1 + 1                    # conv output lengths
    L2 = S + 2 * _PAD - k2 + 1
    P1 = L1 + 3 - k1                              # pooled lengths
    P2 = L2 + 3 - k2

    # ---- one-time weight re-layouts (O(params); traced once, fused by XLA) ----
    wc1 = _band_conv_matrix(w1.astype(jnp.float32), S, L1).astype(jnp.bfloat16)
    wc2 = _band_conv_matrix(w2.astype(jnp.float32), S, L2).astype(jnp.bfloat16)
    bc1 = jnp.tile(b1.astype(jnp.float32), L1).reshape(1, L1 * c1)
    bc2 = jnp.tile(b2.astype(jnp.float32), L2).reshape(1, L2 * c2)
    # Output Linear: reorder columns from torch's flatten order (c*P + l) to the
    # kernel's flat layout (l*C + c), then replicate across seq_len so the masked
    # result is produced directly as a lane-dense (TB, S*F) slab.
    lwf = lw.astype(jnp.float32)
    lw_b1 = lwf[:, :c1 * P1].reshape(F, c1, P1).transpose(2, 1, 0).reshape(P1 * c1, F)
    lw_b2 = lwf[:, c1 * P1:].reshape(F, c2, P2).transpose(2, 1, 0).reshape(P2 * c2, F)
    lw1r = jnp.tile(lw_b1, (1, S)).astype(jnp.bfloat16)            # (P1*C1, S*F)
    lw2r = jnp.tile(lw_b2, (1, S)).astype(jnp.bfloat16)            # (P2*C2, S*F)
    lbr = jnp.tile(lb.astype(jnp.float32).reshape(1, F), (1, S))   # (1, S*F)

    # ---- activations: native layout; no transpose/pad pass (padding lives in wc) ----
    x_flat = X.reshape(B, SF).astype(jnp.bfloat16)
    mask_f = jnp.broadcast_to(mask.astype(jnp.bfloat16)[:, :, None],
                              (B, S, F)).reshape(B, SF)

    # ---- batch tiling (TB a multiple of 8; tiny blocks, far under any VMEM limit) ----
    tb = max(8, _round_up(min(batch_tile, _round_up(B, 8)), 8))
    bp = _round_up(B, tb)
    if bp != B:
        x_flat = jnp.pad(x_flat, ((0, bp - B), (0, 0)))
        mask_f = jnp.pad(mask_f, ((0, bp - B), (0, 0)))

    flops = 2 * bp * SF * (L1 * c1 + L2 * c2) + 2 * bp * SF * (P1 * c1 + P2 * c2)
    bytes_accessed = (2 * x_flat.size + 2 * mask_f.size + 4 * bp * SF
                      + 2 * (wc1.size + wc2.size + lw1r.size + lw2r.size)
                      + 4 * (bc1.size + bc2.size + lbr.size))

    def full(a):
        return pl.BlockSpec(a.shape, lambda i: (0,) * a.ndim)

    kernel = functools.partial(_imputer_kernel, c1=c1, k1=k1, p1=P1,
                               c2=c2, k2=k2, p2=P2)
    out_flat = pl.pallas_call(
        kernel,
        out_shape=jax.ShapeDtypeStruct((bp, SF), jnp.float32),
        grid=(bp // tb,),
        in_specs=[
            pl.BlockSpec((tb, SF), lambda i: (i, 0)),
            pl.BlockSpec((tb, SF), lambda i: (i, 0)),
            full(wc1), full(bc1), full(wc2), full(bc2),
            full(lw1r), full(lw2r), full(lbr),
        ],
        out_specs=pl.BlockSpec((tb, SF), lambda i: (i, 0)),
        compiler_params=pltpu.CompilerParams(dimension_semantics=("parallel",)),
        cost_estimate=pl.CostEstimate(flops=flops, transcendentals=0,
                                      bytes_accessed=bytes_accessed),
    )(x_flat, mask_f, wc1, bc1, wc2, bc2, lw1r, lw2r, lbr)

    return out_flat.reshape(bp, S, F)[:B], None


def init_params(key, feat_dim, seq_len, kernel_sizes=(3, 5), num_filters=(16, 32)):
    """Deterministic synthetic parameters matching the module's (fixed) shapes."""
    lp = seq_len + 2 * _PAD
    pooled = [(lp - k + 1) + 3 - k for k in kernel_sizes]
    d_flat = sum(c * p for c, p in zip(num_filters, pooled))
    ks = jax.random.split(key, 6)
    return {
        "w1": 0.15 * jax.random.normal(ks[0], (num_filters[0], feat_dim, kernel_sizes[0]), jnp.float32),
        "b1": 0.05 * jax.random.normal(ks[1], (num_filters[0],), jnp.float32),
        "w2": 0.15 * jax.random.normal(ks[2], (num_filters[1], feat_dim, kernel_sizes[1]), jnp.float32),
        "b2": 0.05 * jax.random.normal(ks[3], (num_filters[1],), jnp.float32),
        "lw": 0.02 * jax.random.normal(ks[4], (feat_dim, d_flat), jnp.float32),
        "lb": 0.05 * jax.random.normal(ks[5], (feat_dim,), jnp.float32),
    }


def reference(X, mask, params):
    """Pure-JAX reference of the same (fixed) forward semantics, mirroring the
    kernel's bf16 rounding points so the comparison tolerance can stay tight."""
    B, S, F = X.shape
    bf = lambda a: a.astype(jnp.bfloat16).astype(jnp.float32)
    x = jnp.transpose(bf(X), (0, 2, 1))
    x = jnp.pad(x, ((0, 0), (0, 0), (_PAD, _PAD)))
    flats = []
    for w, b in ((params["w1"], params["b1"]), (params["w2"], params["b2"])):
        k = w.shape[2]
        wq = bf(w)
        L = x.shape[2] - k + 1
        conv = jnp.zeros((B, w.shape[0], L), jnp.float32)
        for kk in range(k):
            conv = conv + jnp.einsum("bfl,cf->bcl", x[:, :, kk:kk + L], wq[:, :, kk])
        h = jnp.maximum(conv + b[None, :, None].astype(jnp.float32), 0.0)
        hp = jnp.pad(h, ((0, 0), (0, 0), (1, 1)), constant_values=-jnp.inf)
        P = L + 3 - k
        p = hp[:, :, 0:P]
        for j in range(1, k):
            p = jnp.maximum(p, hp[:, :, j:j + P])
        flats.append(p.reshape(B, -1))
    flat = bf(jnp.concatenate(flats, axis=1))
    y = flat @ bf(params["lw"]).T + params["lb"].astype(jnp.float32)
    return y[:, None, :] * mask[:, :, None].astype(jnp.float32)


if __name__ == "__main__":
    B, seq_len, feat_dim = 16, 8, 4
    key = jax.random.PRNGKey(0)
    kx, km, kp = jax.random.split(key, 3)

    X = jax.random.normal(kx, (B, seq_len, feat_dim), jnp.float32)
    mask = jax.random.uniform(km, (B, seq_len)) > 0.3
    params = init_params(kp, feat_dim, seq_len)

    fwd = jax.jit(functools.partial(timeseries_imputer_cnn, batch_tile=8))
    out, _ = fwd(X, mask, params)
    out = jax.block_until_ready(out)

    ref = reference(X, mask, params)
    assert out.shape == (B, seq_len, feat_dim)
    assert jnp.allclose(out, ref, atol=5e-3, rtol=5e-3), \
        f"mismatch vs reference: max|err|={float(jnp.max(jnp.abs(out - ref)))}"
    print("KERNEL_OK")
</pallas_src>

<mosaic_0001>
module attributes {stable_mosaic.version = 11 : i64} {
  func.func @_imputer_kernel(%arg0: i32, %arg1: memref<8x32xbf16, #tpu.memory_space<vmem>>, %arg2: memref<8x32xbf16, #tpu.memory_space<vmem>>, %arg3: memref<32x288xbf16, #tpu.memory_space<vmem>>, %arg4: memref<1x288xf32, #tpu.memory_space<vmem>>, %arg5: memref<32x512xbf16, #tpu.memory_space<vmem>>, %arg6: memref<1x512xf32, #tpu.memory_space<vmem>>, %arg7: memref<288x32xbf16, #tpu.memory_space<vmem>>, %arg8: memref<448x32xbf16, #tpu.memory_space<vmem>>, %arg9: memref<1x32xf32, #tpu.memory_space<vmem>>, %arg10: memref<8x32xf32, #tpu.memory_space<vmem>>) attributes {dimension_semantics = [#tpu.dimension_semantics<parallel>], iteration_bounds = array<i64: 2>, scalar_prefetch = 0 : i64, scratch_operands = 0 : i64, tpu.core_type = #tpu.core_type<tc>, window_params = [{transform_indices = @transform_0, window_bounds = array<i64: 8, 32>}, {transform_indices = @transform_1, window_bounds = array<i64: 8, 32>}, {pipeline_mode = #tpu.pipeline_mode<synchronous>, transform_indices = @transform_2, window_bounds = array<i64: 32, 288>}, {pipeline_mode = #tpu.pipeline_mode<synchronous>, transform_indices = @transform_3, window_bounds = array<i64: 1, 288>}, {pipeline_mode = #tpu.pipeline_mode<synchronous>, transform_indices = @transform_4, window_bounds = array<i64: 32, 512>}, {pipeline_mode = #tpu.pipeline_mode<synchronous>, transform_indices = @transform_5, window_bounds = array<i64: 1, 512>}, {pipeline_mode = #tpu.pipeline_mode<synchronous>, transform_indices = @transform_6, window_bounds = array<i64: 288, 32>}, {pipeline_mode = #tpu.pipeline_mode<synchronous>, transform_indices = @transform_7, window_bounds = array<i64: 448, 32>}, {pipeline_mode = #tpu.pipeline_mode<synchronous>, transform_indices = @transform_8, window_bounds = array<i64: 1, 32>}, {transform_indices = @transform_9, window_bounds = array<i64: 8, 32>}]} {
    %c0 = arith.constant 0 : index
    %c0_0 = arith.constant 0 : index
    %0 = vector.load %arg1[%c0, %c0_0] : memref<8x32xbf16, #tpu.memory_space<vmem>>, vector<8x32xbf16>
    %c0_1 = arith.constant 0 : index
    %c0_2 = arith.constant 0 : index
    %1 = vector.load %arg3[%c0_1, %c0_2] : memref<32x288xbf16, #tpu.memory_space<vmem>>, vector<32x288xbf16>
    %cst = arith.constant dense<0.000000e+00> : vector<8x288xf32>
    %2 = tpu.matmul %0, %1, %cst {dimension_numbers = #tpu.dot_dimension_numbers<[1], [0], [0], [1], [0, 0, 1, 1], [], []>} : vector<8x32xbf16>, vector<32x288xbf16>, vector<8x288xf32> -> vector<8x288xf32>
    %c0_3 = arith.constant 0 : index
    %c0_4 = arith.constant 0 : index
    %3 = vector.load %arg4[%c0_3, %c0_4] : memref<1x288xf32, #tpu.memory_space<vmem>>, vector<1x288xf32>
    %4 = vector.broadcast %3 : vector<1x288xf32> to vector<8x288xf32>
    %5 = arith.addf %2, %4 : vector<8x288xf32>
    %cst_5 = arith.constant 0.000000e+00 : f32
    %6 = vector.broadcast %cst_5 : f32 to vector<8x288xf32>
    %7 = arith.maximumf %5, %6 : vector<8x288xf32>
    %cst_6 = arith.constant 0.000000e+00 : f32
    %8 = vector.broadcast %cst_6 : f32 to vector<8x16xf32>
    %9 = tpu.concatenate %8, %7, %8 in 1 : vector<8x16xf32>, vector<8x288xf32>, vector<8x16xf32> -> vector<8x320xf32>
    %10 = vector.extract_strided_slice %9 {offsets = [0, 0], sizes = [8, 288], strides = [1, 1]} : vector<8x320xf32> to vector<8x288xf32>
    %11 = vector.extract_strided_slice %9 {offsets = [0, 16], sizes = [8, 288], strides = [1, 1]} : vector<8x320xf32> to vector<8x288xf32>
    %12 = arith.maximumf %10, %11 : vector<8x288xf32>
    %13 = vector.extract_strided_slice %9 {offsets = [0, 32], sizes = [8, 288], strides = [1, 1]} : vector<8x320xf32> to vector<8x288xf32>
    %14 = arith.maximumf %12, %13 : vector<8x288xf32>
    %15 = arith.truncf %14 : vector<8x288xf32> to vector<8x288xbf16>
    %c0_7 = arith.constant 0 : index
    %c0_8 = arith.constant 0 : index
    %16 = vector.load %arg5[%c0_7, %c0_8] : memref<32x512xbf16, #tpu.memory_space<vmem>>, vector<32x512xbf16>
    %cst_9 = arith.constant dense<0.000000e+00> : vector<8x512xf32>
    %17 = tpu.matmul %0, %16, %cst_9 {dimension_numbers = #tpu.dot_dimension_numbers<[1], [0], [0], [1], [0, 0, 1, 1], [], []>} : vector<8x32xbf16>, vector<32x512xbf16>, vector<8x512xf32> -> vector<8x512xf32>
    %c0_10 = arith.constant 0 : index
    %c0_11 = arith.constant 0 : index
    %18 = vector.load %arg6[%c0_10, %c0_11] : memref<1x512xf32, #tpu.memory_space<vmem>>, vector<1x512xf32>
    %19 = vector.broadcast %18 : vector<1x512xf32> to vector<8x512xf32>
    %20 = arith.addf %17, %19 : vector<8x512xf32>
    %cst_12 = arith.constant 0.000000e+00 : f32
    %21 = vector.broadcast %cst_12 : f32 to vector<8x512xf32>
    %22 = arith.maximumf %20, %21 : vector<8x512xf32>
    %cst_13 = arith.constant 0.000000e+00 : f32
    %23 = vector.broadcast %cst_13 : f32 to vector<8x32xf32>
    %24 = tpu.concatenate %23, %22, %23 in 1 : vector<8x32xf32>, vector<8x512xf32>, vector<8x32xf32> -> vector<8x576xf32>
    %25 = vector.extract_strided_slice %24 {offsets = [0, 0], sizes = [8, 448], strides = [1, 1]} : vector<8x576xf32> to vector<8x448xf32>
    %26 = vector.extract_strided_slice %24 {offsets = [0, 32], sizes = [8, 448], strides = [1, 1]} : vector<8x576xf32> to vector<8x448xf32>
    %27 = arith.maximumf %25, %26 : vector<8x448xf32>
    %28 = vector.extract_strided_slice %24 {offsets = [0, 64], sizes = [8, 448], strides = [1, 1]} : vector<8x576xf32> to vector<8x448xf32>
    %29 = arith.maximumf %27, %28 : vector<8x448xf32>
    %30 = vector.extract_strided_slice %24 {offsets = [0, 96], sizes = [8, 448], strides = [1, 1]} : vector<8x576xf32> to vector<8x448xf32>
    %31 = arith.maximumf %29, %30 : vector<8x448xf32>
    %32 = vector.extract_strided_slice %24 {offsets = [0, 128], sizes = [8, 448], strides = [1, 1]} : vector<8x576xf32> to vector<8x448xf32>
    %33 = arith.maximumf %31, %32 : vector<8x448xf32>
    %34 = arith.truncf %33 : vector<8x448xf32> to vector<8x448xbf16>
    %c0_14 = arith.constant 0 : index
    %c0_15 = arith.constant 0 : index
    %35 = vector.load %arg7[%c0_14, %c0_15] : memref<288x32xbf16, #tpu.memory_space<vmem>>, vector<288x32xbf16>
    %cst_16 = arith.constant dense<0.000000e+00> : vector<8x32xf32>
    %36 = tpu.matmul %15, %35, %cst_16 {dimension_numbers = #tpu.dot_dimension_numbers<[1], [0], [0], [1], [0, 0, 1, 1], [], []>} : vector<8x288xbf16>, vector<288x32xbf16>, vector<8x32xf32> -> vector<8x32xf32>
    %c0_17 = arith.constant 0 : index
    %c0_18 = arith.constant 0 : index
    %37 = vector.load %arg8[%c0_17, %c0_18] : memref<448x32xbf16, #tpu.memory_space<vmem>>, vector<448x32xbf16>
    %cst_19 = arith.constant dense<0.000000e+00> : vector<8x32xf32>
    %38 = tpu.matmul %34, %37, %cst_19 {dimension_numbers = #tpu.dot_dimension_numbers<[1], [0], [0], [1], [0, 0, 1, 1], [], []>} : vector<8x448xbf16>, vector<448x32xbf16>, vector<8x32xf32> -> vector<8x32xf32>
    %39 = arith.addf %36, %38 : vector<8x32xf32>
    %c0_20 = arith.constant 0 : index
    %c0_21 = arith.constant 0 : index
    %40 = vector.load %arg9[%c0_20, %c0_21] : memref<1x32xf32, #tpu.memory_space<vmem>>, vector<1x32xf32>
    %41 = vector.broadcast %40 : vector<1x32xf32> to vector<8x32xf32>
    %42 = arith.addf %39, %41 : vector<8x32xf32>
    %c0_22 = arith.constant 0 : index
    %c0_23 = arith.constant 0 : index
    %43 = vector.load %arg2[%c0_22, %c0_23] : memref<8x32xbf16, #tpu.memory_space<vmem>>, vector<8x32xbf16>
    %44 = arith.extf %43 : vector<8x32xbf16> to vector<8x32xf32>
    %45 = arith.mulf %44, %42 : vector<8x32xf32>
    %c0_24 = arith.constant 0 : index
    %c0_25 = arith.constant 0 : index
    %46 = vector.load %arg10[%c0_24, %c0_25] : memref<8x32xf32, #tpu.memory_space<vmem>>, vector<8x32xf32>
    tpu.vector_store %arg10[%c0_24, %c0_25], %45 {strides = array<i32>} : memref<8x32xf32, #tpu.memory_space<vmem>>, vector<8x32xf32>,
    return
  }
  func.func @transform_0(%arg0: i32) -> (i32, i32) {
    %c0_i32 = arith.constant 0 : i32
    %c0_i32_0 = arith.constant 0 : i32
    return %arg0, %c0_i32 : i32, i32
  }
  func.func @transform_1(%arg0: i32) -> (i32, i32) {
    %c0_i32 = arith.constant 0 : i32
    %c0_i32_0 = arith.constant 0 : i32
    return %arg0, %c0_i32 : i32, i32
  }
  func.func @transform_2(%arg0: i32) -> (i32, i32) {
    %c0_i32 = arith.constant 0 : i32
    %c0_i32_0 = arith.constant 0 : i32
    %c0_i32_1 = arith.constant 0 : i32
    return %c0_i32, %c0_i32_0 : i32, i32
  }
  func.func @transform_3(%arg0: i32) -> (i32, i32) {
    %c0_i32 = arith.constant 0 : i32
    %c0_i32_0 = arith.constant 0 : i32
    %c0_i32_1 = arith.constant 0 : i32
    return %c0_i32, %c0_i32_0 : i32, i32
  }
  func.func @transform_4(%arg0: i32) -> (i32, i32) {
    %c0_i32 = arith.constant 0 : i32
    %c0_i32_0 = arith.constant 0 : i32
    %c0_i32_1 = arith.constant 0 : i32
    return %c0_i32, %c0_i32_0 : i32, i32
  }
  func.func @transform_5(%arg0: i32) -> (i32, i32) {
    %c0_i32 = arith.constant 0 : i32
    %c0_i32_0 = arith.constant 0 : i32
    %c0_i32_1 = arith.constant 0 : i32
    return %c0_i32, %c0_i32_0 : i32, i32
  }
  func.func @transform_6(%arg0: i32) -> (i32, i32) {
    %c0_i32 = arith.constant 0 : i32
    %c0_i32_0 = arith.constant 0 : i32
    %c0_i32_1 = arith.constant 0 : i32
    return %c0_i32, %c0_i32_0 : i32, i32
  }
  func.func @transform_7(%arg0: i32) -> (i32, i32) {
    %c0_i32 = arith.constant 0 : i32
    %c0_i32_0 = arith.constant 0 : i32
    %c0_i32_1 = arith.constant 0 : i32
    return %c0_i32, %c0_i32_0 : i32, i32
  }
  func.func @transform_8(%arg0: i32) -> (i32, i32) {
    %c0_i32 = arith.constant 0 : i32
    %c0_i32_0 = arith.constant 0 : i32
    %c0_i32_1 = arith.constant 0 : i32
    return %c0_i32, %c0_i32_0 : i32, i32
  }
  func.func @transform_9(%arg0: i32) -> (i32, i32) {
    %c0_i32 = arith.constant 0 : i32
    %c0_i32_0 = arith.constant 0 : i32
    return %arg0, %c0_i32 : i32, i32
  }
}

</mosaic_0001>

<bundles_post_ra>
// kernel: tile.25
= control target key start
LH: loop header
LB: loop body
LE: loop exit
PB: predicated region body
PF: predicated region fallthrough
CT: control target
= control target key end

     0   :  { %s34_s0 = inlined_call_operand.vmem [shape: f32[16], index: 0, kind: input, shape index: {}]   ;;  %s35_s1 = inlined_call_operand.vmem [shape: f32[18,16], index: 1, kind: output, shape index: {}]  }
   0x1   :  { %v4_v0 = vld [vmem:[%s34_s0] ss:$0 sm:$0xff] }
   0x2   :  { %5 = vst [vmem:[%s35_s1] sm:$0xff] %v4_v0  ;;  %10 = vst [vmem:[%s35_s1 + $0x8] sm:$0xff] %v4_v0 }
   0x3   :  { %11 = vst [vmem:[%s35_s1 + $0x10] sm:$0xff] %v4_v0 }

// kernel: tile.26
= control target key start
LH: loop header
LB: loop body
LE: loop exit
PB: predicated region body
PF: predicated region fallthrough
CT: control target
= control target key end

     0   :  { %s6_s6 = smov 3  ;;  %s20_s9 = smov 3  ;;  %vm3_vm0 = vcmask 130048   ;;  %vm10_vm1 = vcmask 1048448   ;;  %vm17_vm2 = vcmask 917248   ;;  %vm24_vm3 = vcmask 786048   ;;  %s137_s0 = inlined_call_operand.vmem [shape: f32[18,16], index: 0, kind: input, shape index: {}]   ;;  %s138_s1 = inlined_call_operand.vmem [shape: f32[1,288], index: 1, kind: output, shape index: {}]  }
   0x1   :  { %v71_v0 = vld [vmem:[%s137_s0 + $0x7] ss:$8 sm:%s6_s6]   ;;  %s87_s10 = smov 112   ;;  %v73_v1 = vld [vmem:[%s137_s0 + $0x5] ss:$8 sm:%s20_s9]   ;;  %s13_s13 = smov 3 }
   0x2   :  { %8 = vrot.lane.b32.xlu0 %v71_v0, %s87_s10  ;;  %s88_s14 = smov 80   ;;  %v72_v2 = vld [vmem:[%s137_s0 + $0x6] ss:$8 sm:%s13_s13]   ;;  %s27_s17 = smov 3  ;;  %vm31_vm4 = vcmask 654848   ;;  %vm38_vm5 = vcmask 523648  }
   0x3   :  { %22 = vrot.lane.b32.xlu1 %v73_v1, %s88_s14  ;;  %v74_v3 = vld [vmem:[%s137_s0 + $0x4] ss:$8 sm:%s27_s17]   ;;  %s34_s20 = smov 3  ;;  %s41_s21 = smov 3  ;;  %vm45_vm6 = vcmask 392448   ;;  %vm51_vm7 = vcmask 261248  }
   0x4   :  { %s89_s22 = smov 96   ;;  %v2_v4 = vld [vmem:[%s137_s0] ss:$8 sm:$0x7]   ;;  %s90_s25 = smov 64  }
   0x5   :  { %v75_v5 = vld [vmem:[%s137_s0 + $0x3] ss:$8 sm:%s34_s20]   ;;  %4 = vst.msk [vmem:[#allocation0] ss:$8 sm:$0x7] %vm3_vm0, %v2_v4   ;;  %s91_s30 = smov 48  }
   0x6   :  { %15 = vrot.lane.b32.xlu0 %v72_v2, %s89_s22  ;;  %v76_v6 = vld [vmem:[%s137_s0 + $0x2] ss:$8 sm:%s41_s21]   ;;  %s92_s2 = smov 32   ;;  %v77_v7 = vld [vmem:[%s137_s0 + $0x1] ss:$8 sm:$0x7]  }
   0x7   :  { %29 = vrot.lane.b32.xlu1 %v74_v3, %s90_s25  ;;  %s93_s0 = smov 16  }
   0xa   :  { %36 = vrot.lane.b32.xlu0 %v75_v5, %s91_s30 }
   0xb   :  { %43 = vrot.lane.b32.xlu1 %v76_v6, %s92_s2 }
   0xe   :  { %49 = vrot.lane.b32.xlu0 %v77_v7, %s93_s0 }
  0x74   :  { %v9_v8 = vpop.permute.xlu0 %8  }
  0x75   :  { %11 = vst.msk [vmem:[#allocation0] ss:$8 sm:$0x3] %vm10_vm1, %v9_v8   ;;  %v23_v9 = vpop.permute.xlu1 %22  }
  0x78   :  { %v16_v10 = vpop.permute.xlu0 %15  }
  0x79   :  { %18 = vst.msk [vmem:[#allocation0] ss:$8 sm:$0x3] %vm17_vm2, %v16_v10   ;;  %v30_v11 = vpop.permute.xlu1 %29  }
  0x7a   :  { %25 = vst.msk [vmem:[#allocation0] ss:$8 sm:$0x3] %vm24_vm3, %v23_v9  }
  0x7b   :  { %32 = vst.msk [vmem:[#allocation0] ss:$8 sm:$0x3] %vm31_vm4, %v30_v11  }
  0x7c   :  { %v37_v12 = vpop.permute.xlu0 %36  }
  0x7d   :  { %39 = vst.msk [vmem:[#allocation0] ss:$8 sm:$0x3] %vm38_vm5, %v37_v12   ;;  %v44_v13 = vpop.permute.xlu1 %43  }
  0x7e   :  { %46 = vst.msk [vmem:[#allocation0] ss:$8 sm:$0x3] %vm45_vm6, %v44_v13  }
  0x80   :  { %v50_v14 = vpop.permute.xlu0 %49  }
  0x81   :  { %52 = vst.msk [vmem:[#allocation0] ss:$8 sm:$0x7] %vm51_vm7, %v50_v14  }
  0x88   :  { %v56_v15 = vld [vmem:[#allocation0] sm:$0x1]  ;;  %v60_v16 = vld [vmem:[#allocation0 + $0x8] sm:$0x1]  ;;  %v65_v17 = vld [vmem:[#allocation0 + $0x10] sm:$0x1] }
  0x89   :  { %58 = vst [vmem:[%s138_s1] sm:$0x1] %v56_v15  ;;  %78 = vst [vmem:[%s138_s1 + $0x1] sm:$0x1] %v60_v16 }
  0x8a   :  { %79 = vst [vmem:[%s138_s1 + $0x2] sm:$0x1] %v65_v17 }

// kernel: tile.30
= control target key start
LH: loop header
LB: loop body
LE: loop exit
PB: predicated region body
PF: predicated region fallthrough
CT: control target
= control target key end

     0   :  { %s28_s0 = inlined_call_operand.vmem [shape: f32[32], index: 0, kind: input, shape index: {}]   ;;  %s29_s1 = inlined_call_operand.vmem [shape: f32[16,32], index: 1, kind: output, shape index: {}]  }
   0x1   :  { %v4_v0 = vld [vmem:[%s28_s0] ss:$0 sm:$0xff] }
   0x2   :  { %5 = vst [vmem:[%s29_s1] sm:$0xff] %v4_v0  ;;  %8 = vst [vmem:[%s29_s1 + $0x8] sm:$0xff] %v4_v0 }

// kernel: tile.31
= control target key start
LH: loop header
LB: loop body
LE: loop exit
PB: predicated region body
PF: predicated region fallthrough
CT: control target
= control target key end

     0   :  { %s57_s8 = smov 96   ;;  %vm3_vm0 = vcmask 261120   ;;  %s59_s15 = smov 64   ;;  %vm9_vm1 = vcmask 1048320   ;;  %vm15_vm2 = vcmask 785920   ;;  %vm21_vm3 = vcmask 523520   ;;  %s94_s0 = inlined_call_operand.vmem [shape: f32[16,32], index: 0, kind: input, shape index: {}]   ;;  %s95_s1 = inlined_call_operand.vmem [shape: f32[1,512], index: 1, kind: output, shape index: {}]  }
   0x1   :  { %v48_v0 = vld [vmem:[%s94_s0 + $0x3] ss:$4 sm:$0xf]   ;;  %v49_v1 = vld [vmem:[%s94_s0 + $0x2] ss:$4 sm:$0xf]  }
   0x2   :  { %7 = vrot.lane.b32.xlu0 %v48_v0, %s57_s8  ;;  %v50_v2 = vld [vmem:[%s94_s0 + $0x1] ss:$4 sm:$0xf]   ;;  %v2_v3 = vld [vmem:[%s94_s0] ss:$4 sm:$0xf]  }
   0x3   :  { %s58_s0 = smov 32   ;;  %4 = vst.msk [vmem:[#allocation0] ss:$8 sm:$0xf] %vm3_vm0, %v2_v3  }
   0x4   :  { %19 = vrot.lane.b32.xlu1 %v50_v2, %s58_s0 }
   0x6   :  { %13 = vrot.lane.b32.xlu0 %v49_v1, %s59_s15 }
  0x74   :  { %v8_v4 = vpop.permute.xlu0 %7  }
  0x75   :  { %10 = vst.msk [vmem:[#allocation0] ss:$8 sm:$0xf] %vm9_vm1, %v8_v4  }
  0x76   :  { %v20_v5 = vpop.permute.xlu1 %19  }
  0x78   :  { %v14_v6 = vpop.permute.xlu0 %13  }
  0x79   :  { %16 = vst.msk [vmem:[#allocation0] ss:$8 sm:$0xf] %vm15_vm2, %v14_v6  }
  0x7a   :  { %22 = vst.msk [vmem:[#allocation0] ss:$8 sm:$0xf] %vm21_vm3, %v20_v5  }
  0x81   :  { %v26_v7 = vld [vmem:[#allocation0] sm:$0x1]  ;;  %v30_v8 = vld [vmem:[#allocation0 + $0x8] sm:$0x1]  ;;  %v35_v9 = vld [vmem:[#allocation0 + $0x10] sm:$0x1] }
  0x82   :  { %28 = vst [vmem:[%s95_s1] sm:$0x1] %v26_v7  ;;  %51 = vst [vmem:[%s95_s1 + $0x1] sm:$0x1] %v30_v8  ;;  %v41_v10 = vld [vmem:[#allocation0 + $0x18] sm:$0x1] }
  0x83   :  { %52 = vst [vmem:[%s95_s1 + $0x2] sm:$0x1] %v35_v9  ;;  %53 = vst [vmem:[%s95_s1 + $0x3] sm:$0x1] %v41_v10 }

// kernel: timeseries_imputer_cnn.1
= control target key start
LH: loop header
LB: loop body
LE: loop exit
PB: predicated region body
PF: predicated region fallthrough
CT: control target
= control target key end

     0   :  { %s1736_s30 = smov 0   ;;  %s2068_s0 = inlined_call_operand.vmem [shape: bf16[16,32], index: 0, kind: input, shape index: {}]   ;;  %s2069_s1 = inlined_call_operand.vmem [shape: bf16[16,32], index: 1, kind: input, shape index: {}]   ;;  %s2070_s2 = inlined_call_operand.vmem [shape: bf16[32,288], index: 2, kind: input, shape index: {}]   ;;  %s2071_s3 = inlined_call_operand.vmem [shape: f32[1,288], index: 3, kind: input, shape index: {}]   ;;  %s2072_s4 = inlined_call_operand.vmem [shape: bf16[32,512], index: 4, kind: input, shape index: {}]   ;;  %s2073_s5 = inlined_call_operand.vmem [shape: f32[1,512], index: 5, kind: input, shape index: {}]   ;;  %s2074_s6 = inlined_call_operand.vmem [shape: bf16[288,32], index: 6, kind: input, shape index: {}]   ;;  %s2075_s7 = inlined_call_operand.vmem [shape: bf16[448,32], index: 7, kind: input, shape index: {}]   ;;  %s2076_s8 = inlined_call_operand.vmem [shape: f32[1,32], index: 8, kind: input, shape index: {}]   ;;  %s2077_s9 = inlined_call_operand.vmem [shape: f32[16,32], index: 9, kind: output, shape index: {}]  }
   0x1 LB: > { %s1405_s10 = sadd.s32 4294967295, %s1676_s30   ;;  %p1409_p0 = scmp.ge.s32.totalorder %s1676_s30, 1  ;;  %s1676_s30 = sphi %s1736_s30, %s19_s30  }
   0x2   : > { %p295_p1 = scmp.lt.s32.totalorder %s1676_s30, 3 }
   0x4   : > { %p296_p2 = pnand %p1409_p0, %p295_p1 }
   0x5   : > { %v1604_v0 = vld [vmem:[%s2070_s2 + $0x4] ss:$12 sps:$4 sm:$0xff] (!%p296_p2)   ;;  %v1678_v1 = vmov (!%p296_p2), 0.0   ;;  %v1606_v2 = vld [vmem:[%s2070_s2 + $0x8] ss:$12 sps:$4 sm:$0xff] (!%p296_p2)   ;;  %vm1679_vm0 = vmmov (!%p296_p2), 0   ;;  %v357_v17 = vlaneseq (!%p296_p2) }
   0x6   : > { %299 = sbr.rel (%p296_p2) target bundleno = 755 (0x2f3), region = 56  ;;  %1532 = vmatprep.subr.bf16.mxu1 (!%p296_p2), %v1678_v1  ;;  %1536 = vmatprep.mubr.msk.bf16.mxu1 (!%p296_p2), %vm1679_vm0, %v1678_v1  ;;  %v1607_v3 = vld [vmem:[%s2070_s2] ss:$12 sps:$4 sm:$0xff] (!%p296_p2)   ;;  %p333_p3 = scmp.lt.s32.totalorder (!%p296_p2), %s1405_s10, 1  ;;  %v1608_v4 = vld [vmem:[%s2070_s2 + $0x1c] ss:$12 sps:$4 sm:$0xff] (!%p296_p2)  }
   0x7   : > { %408 = vmatprep.subr.bf16.mxu0 (!%p296_p2), %v1604_v0  ;;  %1533 = vmatpush3.bf16.msra.mxu1 (!%p296_p2), %v1606_v2  ;;  %v1680_v5 = vmov (!%p296_p2), 0   ;;  %v1610_v6 = vld [vmem:[%s2070_s2 + $0x20] ss:$12 sps:$4 sm:$0xff] (!%p296_p2)   ;;  %v1611_v7 = vld [vmem:[%s2070_s2 + $0x18] ss:$12 sps:$4 sm:$0xff] (!%p296_p2)   ;;  %vm404_vm1 = vcmask (!%p296_p2), 261120  }
   0x8   : > { %440 = vmatprep.mubr.bf16.mxu0 (!%p296_p2), %v1680_v5  ;;  %409 = vmatpush1.bf16.msra.mxu0 (!%p296_p2), %v1607_v3  ;;  %v1614_v8 = vld [vmem:[%s2072_s4 + $0xc] ss:$16 sps:$4 sm:$0xff] (!%p296_p2)   ;;  %v1612_v9 = vld [vmem:[%s2072_s4 + $0x8] ss:$16 sps:$4 sm:$0xff] (!%p296_p2)   ;;  %v1617_v10 = vld [vmem:[%s2072_s4 + $0x4] ss:$16 sps:$4 sm:$0xff] (!%p296_p2)  }
   0x9   : > { %1534 = vmatprep.subr.bf16.mxu1 (!%p296_p2), %v1678_v1  ;;  %410 = vmatprep.subr.bf16.mxu0 (!%p296_p2), %v1608_v4  ;;  %v1615_v12 = vld [vmem:[%s2072_s4] ss:$16 sps:$4 sm:$0xff] (!%p296_p2)   ;;  %v1620_v13 = vld [vmem:[%s2072_s4 + $0x2c] ss:$16 sps:$4 sm:$0xff] (!%p296_p2)   ;;  %v1618_v14 = vld [vmem:[%s2072_s4 + $0x28] ss:$16 sps:$4 sm:$0xff] (!%p296_p2)  }
   0xa   : > { %v1623_v15 = vld [vmem:[%s2072_s4 + $0x24] ss:$16 sps:$4 sm:$0xff] (!%p296_p2)   ;;  %v1621_v16 = vld [vmem:[%s2072_s4 + $0x20] ss:$16 sps:$4 sm:$0xff] (!%p296_p2)   ;;  %v358_v18 = vshrl.u32 (!%p296_p2), %v357_v17, 7  ;;  %s1681_s29 = smov (!%p296_p2), 32  }
   0xb   : > { %1535 = vmatpush3.bf16.msra.mxu1 (!%p296_p2), %v1610_v6  ;;  %v355_v20 = vld [vmem:[%s2071_s3] sm:$0x7] (!%p296_p2)  ;;  %s1682_s11 = smov (!%p296_p2), 16   ;;  %v1629_v4 = vld [vmem:[%s2075_s7 + $0x48] sm:$0xff] (!%p296_p2)   ;;  %s1683_s22 = smov (!%p296_p2), 96   ;;  %vm501_vm2 = vcmask (!%p296_p2), 130048  }
   0xc   : > { %411 = vmatpush1.bf16.msra.mxu0 (!%p296_p2), %v1611_v7  ;;  %656 = vmatprep.subr.bf16.mxu1 (!%p296_p2), %v1614_v8  ;;  %v367_v19 = vsub.s32 (!%p296_p2), 2, %v358_v18  ;;  %v363_v21 = vsub.s32 (!%p296_p2), 1, %v358_v18  ;;  %v569_v30 = vsub.s32 (!%p296_p2), 3, %v358_v18  ;;  %v553_v35 = vld [vmem:[%s2073_s5] sm:$0xf] (!%p296_p2)  ;;  %v359_v36 = vsub.s32 (!%p296_p2), 0, %v358_v18 }
   0xd   : > { %s2079_s10 = smov (!%p333_p3, %s1405_s10), 1  ;;  %615 = vmatprep.subr.bf16.mxu0 %v1617_v10  ;;  %v1624_v0 = vld [vmem:[%s2075_s7 + $0x80] sm:$0xff]   ;;  %v1625_v6 = vld [vmem:[%s2075_s7 + $0x88] sm:$0xff]   ;;  %v1632_v8 = vld [vmem:[%s2075_s7 + $0x50] sm:$0xff]   ;;  %s1684_s12 = smov 64   ;;  %vm508_vm3 = vcmask 392192  }
   0xe   : > { %s1410_s23 = sshll.u32 %s2079_s10, 2  ;;  %v368_v22 = vrot.slane %v355_v20, %v367_v19  ;;  %v364_v23 = vrot.slane %v355_v20, %v363_v21  ;;  %v558_v39 = vrot.slane %v553_v35, %v359_v36  ;;  %v570_v40 = vrot.slane %v553_v35, %v569_v30  ;;  %v1626_v2 = vld [vmem:[%s2075_s7 + $0x40] sm:$0xff]   ;;  %v1630_v7 = vld [vmem:[%s2075_s7 + $0x8] sm:$0xff]   ;;  %v1633_v10 = vld [vmem:[%s2075_s7 + $0x10] sm:$0xff]   ;;  %s1685_s21 = smov 112  }
   0xf   : > { %s336_s28 = scalar_lea.vmem %s2068_s0, %s1410_s23  ;;  %v562_v42 = vrot.slane %v553_v35, %v363_v21  ;;  %v566_v44 = vrot.slane %v553_v35, %v367_v19  ;;  %v360_v59 = vrot.slane %v355_v20, %v359_v36  ;;  %v1627_v3 = vld [vmem:[%s2075_s7] sm:$0xff]   ;;  %v1640_v18 = vld [vmem:[%s2075_s7 + $0xb0] sm:$0xff]   ;;  %v1641_v19 = vld [vmem:[%s2075_s7 + $0x68] sm:$0xff]   ;;  %vm533_vm4 = vcmask 785408   ;;  %s1412_s25 = sshll.u32 %s2079_s10, 3 }
  0x10   : > { %v346_v11 = vld [vmem:[%s336_s28] sm:$0xf]  ;;  %v1642_v20 = vld [vmem:[%s2075_s7 + $0x28] sm:$0xff]   ;;  %v1643_v21 = vld [vmem:[%s2075_s7 + $0xb8] sm:$0xff]   ;;  %vm751_vm5 = vcmask 523264   ;;  %vm518_vm6 = vcmask 916480   ;;  %s344_s28 = scalar_lea.vmem %s2077_s9, %s1412_s25 }
  0x11   : > { %1537 = vmatmul.mubr.msk.bf16.vlgmr.msra.gmra.mrb[0].mxu1 %vm404_vm1, %v346_v11  ;;  %1419 = vmatmul.mubr.msk.bf16.vlgmr.msra.gmra.mrb[0].mxu0 %vm404_vm1, %v346_v11  ;;  %v1639_v17 = vld [vmem:[%s2075_s7 + $0x20] sm:$0xff]   ;;  %v1648_v36 = vld [vmem:[%s2075_s7 + $0x38] sm:$0xff]  }
  0x12   : > { %657 = vmatpush1.bf16.msra.mxu1 %v1612_v9  ;;  %616 = vmatpush1.bf16.msra.mxu0 %v1615_v12  ;;  %v1628_v9 = vld [vmem:[%s2075_s7 + $0x90] sm:$0xff]   ;;  %v1634_v12 = vld [vmem:[%s2075_s7 + $0xa0] sm:$0xff]  }
  0x13   : > { %658 = vmatprep.subr.bf16.mxu1 %v1620_v13  ;;  %617 = vmatprep.subr.bf16.mxu0 %v1623_v15  ;;  %v1635_v13 = vld [vmem:[%s2075_s7 + $0x58] sm:$0xff]   ;;  %v1637_v15 = vld [vmem:[%s2075_s7 + $0xa8] sm:$0xff]   ;;  %v1646_v30 = vld [vmem:[%s2075_s7 + $0xc0] sm:$0xff]  }
  0x14   : > { %688 = vmatprep.mubr.bf16.mxu1 %v1680_v5  ;;  %647 = vmatprep.mubr.bf16.mxu0 %v1680_v5 }
  0x16   : > { %659 = vmatpush1.bf16.msra.mxu1 %v1618_v14  ;;  %618 = vmatpush1.bf16.msra.mxu0 %v1621_v16  ;;  %v1636_v14 = vld [vmem:[%s2075_s7 + $0x18] sm:$0xff]   ;;  %v1638_v16 = vld [vmem:[%s2075_s7 + $0x60] sm:$0xff]  }
  0x17   : > { %1097 = vmatprep.subr.bf16.mxu1 %v1680_v5  ;;  %1485 = vmatprep.subr.bf16.mxu0 %v1626_v2 }
  0x19   : > { %1430 = vmatmul.mubr.msk.bf16.vlgmr.msra.gmra.mrb[4].mxu1 %vm404_vm1, %v346_v11  ;;  %1429 = vmatmul.mubr.msk.bf16.vlgmr.msra.gmra.mrb[4].mxu0 %vm404_vm1, %v346_v11  ;;  %v1631_v11 = vld [vmem:[%s2075_s7 + $0x98] sm:$0xff]  }
  0x1a   : > { %1098 = vmatpush1.bf16.msra.mxu1 %v1624_v0  ;;  %1486 = vmatpush3.bf16.msra.mxu0 %v1627_v3 }
  0x1b   : > { %1099 = vmatprep.subr.bf16.mxu1 %v1680_v5  ;;  %1487 = vmatprep.subr.bf16.mxu0 %v1629_v4 }
  0x1e   : > { %1100 = vmatpush1.bf16.msra.mxu1 %v1625_v6  ;;  %1488 = vmatpush3.bf16.msra.mxu0 %v1630_v7 }
  0x1f   : > { %1101 = vmatprep.subr.bf16.mxu1 %v1680_v5  ;;  %1489 = vmatprep.subr.bf16.mxu0 %v1632_v8 }
  0x22   : > { %1102 = vmatpush1.bf16.msra.mxu1 %v1628_v9  ;;  %1490 = vmatpush3.bf16.msra.mxu0 %v1633_v10 }
  0x23   : > { %1103 = vmatprep.subr.bf16.mxu1 %v1680_v5  ;;  %1491 = vmatprep.subr.bf16.mxu0 %v1635_v13 }
  0x26   : > { %1104 = vmatpush1.bf16.msra.mxu1 %v1631_v11  ;;  %1492 = vmatpush3.bf16.msra.mxu0 %v1636_v14 }
  0x27   : > { %1105 = vmatprep.subr.bf16.mxu1 %v1680_v5  ;;  %1493 = vmatprep.subr.bf16.mxu0 %v1638_v16 }
  0x2a   : > { %1106 = vmatpush1.bf16.msra.mxu1 %v1634_v12  ;;  %1494 = vmatpush3.bf16.msra.mxu0 %v1639_v17 }
  0x2b   : > { %1107 = vmatprep.subr.bf16.mxu1 %v1680_v5  ;;  %1495 = vmatprep.subr.bf16.mxu0 %v1641_v19 }
  0x2e   : > { %1108 = vmatpush1.bf16.msra.mxu1 %v1637_v15  ;;  %1496 = vmatpush3.bf16.msra.mxu0 %v1642_v20 }
  0x2f   : > { %1109 = vmatprep.subr.bf16.mxu1 %v1680_v5 }
  0x32   : > { %1110 = vmatpush1.bf16.msra.mxu1 %v1640_v18 }
  0x33   : > { %1111 = vmatprep.subr.bf16.mxu1 %v1680_v5 }
  0x36   : > { %1112 = vmatpush1.bf16.msra.mxu1 %v1643_v21 }
  0x37   : > { %1113 = vmatprep.subr.bf16.mxu1 %v1680_v5 }
  0x3a   : > { %1114 = vmatpush1.bf16.msra.mxu1 %v1646_v30 }
  0x3b   : > { %1115 = vmatprep.subr.bf16.mxu1 %v1680_v5 }
  0xe4   : > { %v483_v24 = vpop.f32.mrb[0].mxu1  ;;  %v442_v25 = vpop.f32.mrb[0].mxu0 }
  0xe5   : > { %v484_v26 = vadd.f32 %v483_v24, %v368_v22  ;;  %v1538_v27 = vpop.f32.mrb[1].mxu1  ;;  %v444_v28 = vpop.f32.mrb[1].mxu0  ;;  %v443_v62 = vadd.f32 %v442_v25, %v360_v59 }
  0xe6   : > { %v486_v29 = vpop.f32.mrb[2].mxu1  ;;  %v445_v31 = vadd.f32 %v444_v28, %v364_v23  ;;  %v446_v33 = vpop.f32.mrb[2].mxu0  ;;  %v1645_v28 = vld [vmem:[%s2075_s7 + $0x30] sm:$0xff]  }
  0xe7   : > { %v491_v32 = vmax.f32 %v484_v26, 0.0  ;;  %v1539_v34 = vpop.f32.mrb[3].mxu1  ;;  %v447_v37 = vpop.f32.mrb[3].mxu0  ;;  %v489_v63 = vmax.f32 %v443_v62, 0.0  ;;  %v1644_v26 = vld [vmem:[%s2075_s7 + $0x70] sm:$0xff]  }
  0xe8   : > { %v490_v38 = vmax.f32 %v445_v31, 0.0  ;;  %1497 = vmatprep.subr.bf16.mxu0 %v1644_v26  ;;  %v1647_v34 = vld [vmem:[%s2075_s7 + $0x78] sm:$0xff]   ;;  %v1649_v37 = vld [vmem:[%s2075_s7 + $0xc8] sm:$0xff]  }
  0xe9   : > { %1498 = vmatpush3.bf16.msra.mxu0 %v1645_v28  ;;  %1116 = vmatpush1.bf16.msra.mxu1 %v1649_v37 }
  0xea   : > { %v1569_v41 = vpack.i.bf16 %v491_v32, %v490_v38  ;;  %1499 = vmatprep.subr.bf16.mxu0 %v1647_v34  ;;  %1117 = vmatprep.subr.bf16.mxu1 %v1680_v5  ;;  %v1653_v34 = vld [vmem:[%s2074_s6 + $0x48] sm:$0xff]  }
  0xec   : > { %v690_v43 = vpop.f32.mrb[4].mxu1  ;;  %v649_v45 = vpop.f32.mrb[4].mxu0 }
  0xed   : > { %v692_v46 = vpop.f32.mrb[5].mxu1  ;;  %v650_v47 = vadd.f32 %v649_v45, %v558_v39  ;;  %v651_v49 = vpop.f32.mrb[5].mxu0  ;;  %v691_v57 = vadd.f32 %v690_v43, %v566_v44  ;;  %1500 = vmatpush3.bf16.msra.mxu0 %v1648_v36 }
  0xee   : > { %v693_v48 = vadd.f32 %v692_v46, %v570_v40  ;;  %v694_v50 = vpop.f32.mrb[6].mxu1  ;;  %v652_v51 = vadd.f32 %v651_v49, %v562_v42  ;;  %v653_v52 = vpop.f32.mrb[6].mxu0  ;;  %v1650_v40 = vld [vmem:[%s2074_s6 + $0x40] sm:$0xff]   ;;  %v1652_v42 = vld [vmem:[%s2075_s7 + $0xd0] sm:$0xff]  }
  0xef   : > { %v695_v53 = vpop.f32.mrb[7].mxu1  ;;  %v697_v54 = vmax.f32 %v650_v47, 0.0  ;;  %v654_v56 = vpop.f32.mrb[7].mxu0  ;;  %v699_v61 = vmax.f32 %v691_v57, 0.0  ;;  %1507 = vmatprep.subr.bf16.mxu0 %v1650_v40  ;;  %1118 = vmatpush1.bf16.msra.mxu1 %v1652_v42  ;;  %v1655_v47 = vld [vmem:[%s2075_s7 + $0xd8] sm:$0xff]  }
  0xf0   : > { %v700_v55 = vmax.f32 %v693_v48, 0.0  ;;  %v698_v58 = vmax.f32 %v652_v51, 0.0  ;;  %1119 = vmatprep.subr.bf16.mxu1 %v1680_v5 }
  0xf2   : > { %711 = vrot.lane.b32.xlu1 %v700_v55, %s1681_s29  ;;  %v1564_v60 = vpack.i.bf16 %v698_v58, %v697_v54 }
  0xf3   : > { %1120 = vmatpush1.bf16.msra.mxu1 %v1655_v47 }
  0xf4   : > { %1565 = vrot.lane.b32.xlu0 %v1564_v60, %s1681_s29  ;;  %1540 = vmatprep.subr.bf16.mxu1 %v1678_v1 }
  0xf6   : > { %1570 = vrot.lane.b32.xlu1 %v1569_v41, %s1682_s11 }
  0xf8   : > { %709 = vrot.lane.b32.xlu0 %v699_v61, %s1681_s29 }
  0xfc   : > { %495 = vrot.lane.b32.xlu0 %v489_v63, %s1682_s11 }
 0x164   : > { %v712_v23 = vpop.permute.xlu1 %711 }
 0x165   : > { %v1944_v49 = vsel %vm404_vm1, %v712_v23, 0.0 }
 0x166   : > { %v1566_v22 = vpop.permute.xlu0 %1565 }
 0x167   : > { %v1568_v24 = vunpack.i.h.bf16 %v1566_v22  ;;  %v1567_v25 = vunpack.i.l.bf16 %v1566_v22 }
 0x168   : > { %v1571_v35 = vpop.permute.xlu1 %1570 }
 0x169   : > { %v1886_v27 = vsel %vm404_vm1, 0.0, %v1567_v25  ;;  %v1898_v31 = vsel %vm404_vm1, %v1567_v25, %v1568_v24  ;;  %v1573_v38 = vunpack.i.h.bf16 %v1571_v35  ;;  %v1572_v39 = vunpack.i.l.bf16 %v1571_v35 }
 0x16a   : > { %v710_v29 = vpop.permute.xlu0 %709  ;;  %724 = vrot.lane.b32.xlu0 %v1886_v27, %s1683_s22 }
 0x16b   : > { %v1901_v32 = vsel %vm404_vm1, %v1568_v24, %v710_v29  ;;  %v503_v43 = vsel %vm501_vm2, %v1572_v39, %v1573_v38  ;;  %v1928_v44 = vsel %vm404_vm1, %v710_v29, %v712_v23  ;;  %v1651_v29 = vld [vmem:[%s2074_s6] sm:$0xff]  }
 0x16c   : > { %v1574_v33 = vpack.i.bf16 %v1901_v32, %v1898_v31  ;;  %v1935_v46 = vsel %vm508_vm3, %v503_v43, 0.0  ;;  %v1589_v5 = vpack.i.bf16 %v1944_v49, %v1928_v44  ;;  %v1654_v43 = vld [vmem:[%s2074_s6 + $0x8] sm:$0xff]  }
 0x16e   : > { %1575 = vrot.lane.b32.xlu1 %v1574_v33, %s1683_s22  ;;  %743 = vrot.lane.b32.xlu0 %v1886_v27, %s1684_s12  ;;  %v496_v41 = vpop.permute.xlu0 %495 }
 0x16f   : > { %v1931_v45 = vsel %vm501_vm2, %v496_v41, %v1572_v39  ;;  %v1954_v50 = vsel %vm501_vm2, 0.0, %v496_v41 }
 0x170   : > { %v1594_v48 = vpack.i.bf16 %v1935_v46, %v1931_v45 }
 0x172   : > { %1580 = vrot.lane.b32.xlu1 %v1574_v33, %s1684_s12  ;;  %764 = vrot.lane.b32.xlu0 %v1886_v27, %s1681_s29 }
 0x176   : > { %1585 = vrot.lane.b32.xlu1 %v1574_v33, %s1681_s29  ;;  %749 = vrot.lane.b32.xlu0 %v1928_v44, %s1684_s12 }
 0x17a   : > { %730 = vrot.lane.b32.xlu1 %v1928_v44, %s1683_s22  ;;  %1595 = vrot.lane.b32.xlu0 %v1594_v48, %s1685_s21 }
 0x17e   : > { %1590 = vrot.lane.b32.xlu1 %v1589_v5, %s1681_s29  ;;  %1600 = vrot.lane.b32.xlu0 %v1594_v48, %s1683_s22  ;;  %s340_s29 = scalar_lea.vmem %s2069_s1, %s1410_s23 }
 0x182   : > { %512 = vrot.lane.b32.xlu1 %v1954_v50, %s1685_s21 }
 0x186   : > { %527 = vrot.lane.b32.xlu1 %v1954_v50, %s1683_s22 }
 0x1dc   : > { %v725_v51 = vpop.permute.xlu0 %724 }
 0x1e0   : > { %v1576_v52 = vpop.permute.xlu1 %1575  ;;  %v744_v53 = vpop.permute.xlu0 %743 }
 0x1e1   : > { %v1578_v54 = vunpack.i.h.bf16 %v1576_v52  ;;  %v1577_v55 = vunpack.i.l.bf16 %v1576_v52 }
 0x1e3   : > { %v732_v58 = vsel %vm533_vm4, %v725_v51, %v1577_v55  ;;  %v733_v59 = vsel %vm533_vm4, %v1577_v55, %v1578_v54  ;;  %v1658_v55 = vld [vmem:[%s2074_s6 + $0x80] sm:$0xff]  }
 0x1e4   : > { %v1581_v56 = vpop.permute.xlu1 %1580  ;;  %v765_v57 = vpop.permute.xlu0 %764  ;;  %v739_v0 = vmax.f32 %v1886_v27, %v732_v58  ;;  %v740_v2 = vmax.f32 %v1898_v31, %v733_v59  ;;  %v1662_v59 = vld [vmem:[%s2074_s6 + $0x60] sm:$0xff]  }
 0x1e5   : > { %v1583_v60 = vunpack.i.h.bf16 %v1581_v56  ;;  %v1582_v61 = vunpack.i.l.bf16 %v1581_v56  ;;  %v1659_v56 = vld [vmem:[%s2074_s6 + $0x58] sm:$0xff]  }
 0x1e7   : > { %v752_v62 = vsel %vm751_vm5, %v744_v53, %v1582_v61  ;;  %v753_v63 = vsel %vm751_vm5, %v1582_v61, %v1583_v60 }
 0x1e8   : > { %v1586_v3 = vpop.permute.xlu1 %1585  ;;  %v750_v4 = vpop.permute.xlu0 %749  ;;  %v759_v8 = vmax.f32 %v739_v0, %v752_v62  ;;  %v760_v9 = vmax.f32 %v740_v2, %v753_v63  ;;  %v1664_v62 = vld [vmem:[%s2074_s6 + $0x68] sm:$0xff]   ;;  %v1666_v63 = vld [vmem:[%s2074_s6 + $0x70] sm:$0xff]  }
 0x1e9   : > { %v1588_v6 = vunpack.i.h.bf16 %v1586_v3  ;;  %v1587_v7 = vunpack.i.l.bf16 %v1586_v3  ;;  %v754_v24 = vsel %vm751_vm5, %v1583_v60, %v750_v4  ;;  %v1667_v3 = vld [vmem:[%s2074_s6 + $0x30] sm:$0xff]  }
 0x1eb   : > { %v774_v10 = vsel %vm404_vm1, %v765_v57, %v1587_v7  ;;  %v775_v11 = vsel %vm404_vm1, %v1587_v7, %v1588_v6  ;;  %v1661_v57 = vld [vmem:[%s2074_s6 + $0x88] sm:$0xff]  }
 0x1ec   : > { %v731_v12 = vpop.permute.xlu1 %730  ;;  %v1967_v13 = vpop.permute.xlu0 %1595  ;;  %v783_v14 = vmax.f32 %v760_v9, %v775_v11  ;;  %v782_v15 = vmax.f32 %v759_v8, %v774_v10  ;;  %v1669_v8 = vld [vmem:[%s2074_s6 + $0x38] sm:$0xff]  }
 0x1ed   : > { %v734_v16 = vsel %vm533_vm4, %v1578_v54, %v731_v12  ;;  %v1598_v17 = vunpack.i.h.bf16 %v1967_v13  ;;  %v1597_v18 = vunpack.i.l.bf16 %v1967_v13  ;;  %v742_v20 = vmax.f32 %v1928_v44, %v731_v12  ;;  %v1657_v54 = vld [vmem:[%s2074_s6 + $0x10] sm:$0xff]  }
 0x1ee   : > { %v741_v19 = vmax.f32 %v1901_v32, %v734_v16  ;;  %v787_v21 = vmax.f32 %v783_v14, %v1901_v32  ;;  %v786_v22 = vmax.f32 %v782_v15, %v1898_v31 }
 0x1ef   : > { %v520_v23 = vsel %vm518_vm6, %v1597_v18, %v1598_v17  ;;  %v762_v36 = vmax.f32 %v742_v20, %v750_v4  ;;  %v1668_v4 = vld [vmem:[%s2074_s6 + $0x78] sm:$0xff]  }
 0x1f0   : > { %v1591_v25 = vpop.permute.xlu1 %1590  ;;  %v1980_v26 = vpop.permute.xlu0 %1600  ;;  %v791_v27 = vpack.c.bf16 %v787_v21, %v787_v21  ;;  %v790_v28 = vpack.c.bf16 %v786_v22, %v786_v22  ;;  %v761_v35 = vmax.f32 %v741_v19, %v754_v24  ;;  %v525_v37 = vmax.f32 %v1931_v45, %v520_v23  ;;  %v1656_v45 = vld [vmem:[%s2074_s6 + $0x50] sm:$0xff]  }
 0x1f1   : > { %v1593_v30 = vunpack.i.h.bf16 %v1591_v25  ;;  %v1592_v33 = vunpack.i.l.bf16 %v1591_v25  ;;  %v1603_v32 = vunpack.i.h.bf16 %v1980_v26  ;;  %v1602_v31 = vunpack.i.l.bf16 %v1980_v26 }
 0x1f2   : > { %1089 = vmatprep.mubr.bf16.mxu0 %v791_v27 }
 0x1f3   : > { %v776_v38 = vsel %vm404_vm1, %v1588_v6, %v1592_v33  ;;  %v777_v39 = vsel %vm404_vm1, %v1592_v33, %v1593_v30  ;;  %v535_v40 = vsel %vm533_vm4, %v1602_v31, %v1603_v32  ;;  %1090 = vmatmul.mubr.bf16.vlgmr.msra.gmra.mrb[8].mxu0 %v790_v28  ;;  %v1336_v28 = vld [vmem:[%s340_s29] sm:$0xf] }
 0x1f4   : > { %v784_v41 = vmax.f32 %v761_v35, %v776_v38  ;;  %v785_v42 = vmax.f32 %v762_v36, %v777_v39  ;;  %1508 = vmatpush3.bf16.msra.mxu0 %v1651_v29  ;;  %v540_v47 = vmax.f32 %v525_v37, %v535_v40  ;;  %v513_v61 = vpop.permute.xlu1 %512  ;;  %v1479_v33 = vld [vmem:[%s2076_s8] ss:$0 sm:$0xff] }
 0x1f5   : > { %1509 = vmatprep.subr.bf16.mxu0 %v1653_v34  ;;  %v519_v2 = vsel %vm518_vm6, %v513_v61, %v1597_v18 }
 0x1f6   : > { %v543_v48 = vpack.c.bf16 %v540_v47, %v540_v47  ;;  %v789_v5 = vmax.f32 %v785_v42, %v1944_v49  ;;  %v788_v51 = vmax.f32 %v784_v41, %v1928_v44  ;;  %v526_v44 = vmax.f32 %v1935_v46, %v1598_v17  ;;  %v1660_v49 = vld [vmem:[%s2074_s6 + $0x18] sm:$0xff]   ;;  %v1663_v46 = vld [vmem:[%s2074_s6 + $0x20] sm:$0xff]  }
 0x1f7   : > { %v524_v7 = vmax.f32 %v1954_v50, %v519_v2 }
 0x1f8   : > { %1510 = vmatpush3.bf16.msra.mxu0 %v1654_v43  ;;  %1280 = vmatprep.mubr.bf16.mxu0 %v543_v48  ;;  %v793_v52 = vpack.c.bf16 %v789_v5, %v789_v5  ;;  %v792_v53 = vpack.c.bf16 %v788_v51, %v788_v51  ;;  %v541_v58 = vmax.f32 %v526_v44, %v1603_v32  ;;  %v528_v0 = vpop.permute.xlu1 %527  ;;  %v1337_v32 = vunpack.c.l.bf16 %v1336_v28 }
 0x1f9   : > { %1511 = vmatprep.subr.bf16.mxu0 %v1656_v45  ;;  %v534_v6 = vsel %vm533_vm4, %v528_v0, %v1602_v31 }
 0x1fa   : > { %1459 = vmatprep.mubr.msk.bf16.mxu1 %vm751_vm5, %v793_v52  ;;  %v544_v60 = vpack.c.bf16 %v541_v58, %v541_v58  ;;  %v539_v9 = vmax.f32 %v524_v7, %v534_v6 }
 0x1fb   : > { %1130 = vmatmul.mubr.bf16.vlgmr.msra.gmra.mrb[8].mxu1 %v792_v53 }
 0x1fc   : > { %1512 = vmatpush3.bf16.msra.mxu0 %v1657_v54  ;;  %1541 = vmatpush3.bf16.msra.mxu1 %v1658_v55  ;;  %v542_v10 = vpack.c.bf16 %v539_v9, %v539_v9 }
 0x1fd   : > { %1513 = vmatprep.subr.bf16.mxu0 %v1659_v56  ;;  %1542 = vmatprep.subr.bf16.mxu1 %v1678_v1 }
 0x1fe   : > { %1544 = vmatprep.mubr.msk.bf16.mxu1 %vm1679_vm0, %v1678_v1  ;;  %v1665_v1 = vld [vmem:[%s2074_s6 + $0x28] sm:$0xff]  }
 0x200   : > { %1514 = vmatpush3.bf16.msra.mxu0 %v1660_v49  ;;  %1543 = vmatpush3.bf16.msra.mxu1 %v1661_v57 }
 0x201   : > { %1515 = vmatprep.subr.bf16.mxu0 %v1662_v59 }
 0x203   : > { %1545 = vmatmul.mubr.msk.bf16.vlgmr.msra.gmra.mrb[12].mxu1 %vm404_vm1, %v544_v60 }
 0x204   : > { %1516 = vmatpush3.bf16.msra.mxu0 %v1663_v46 }
 0x205   : > { %1517 = vmatprep.subr.bf16.mxu0 %v1664_v62 }
 0x208   : > { %1518 = vmatpush3.bf16.msra.mxu0 %v1665_v1 }
 0x209   : > { %1519 = vmatprep.subr.bf16.mxu0 %v1666_v63 }
 0x20c   : > { %1520 = vmatpush3.bf16.msra.mxu0 %v1667_v3 }
 0x20d   : > { %1521 = vmatprep.subr.bf16.mxu0 %v1668_v4 }
 0x210   : > { %1522 = vmatpush3.bf16.msra.mxu0 %v1669_v8 }
 0x213   : > { %1281 = vmatmul.mubr.bf16.vlgmr.msra.gmra.mrb[12].mxu0 %v542_v10 }
 0x2c6   : > { %v1501_v11 = vpop.f32.mrb[8].mxu0 }
 0x2c7   : > { %v1502_v12 = vpop.f32.mrb[9].mxu0 }
 0x2c8   : > { %v1503_v13 = vadd.f32 %v1502_v12, %v1501_v11  ;;  %v1504_v14 = vpop.f32.mrb[10].mxu0 }
 0x2c9   : > { %v1505_v15 = vpop.f32.mrb[11].mxu0 }
 0x2ce   : > { %v1131_v16 = vpop.f32.mrb[8].mxu1 }
 0x2cf   : > { %v1132_v17 = vadd.f32 %v1503_v13, %v1131_v16  ;;  %v1133_v18 = vpop.f32.mrb[9].mxu1 }
 0x2d0   : > { %v1134_v50 = vpop.f32.mrb[10].mxu1 }
 0x2d1   : > { %v1135_v19 = vpop.f32.mrb[11].mxu1 }
 0x2d6   : > { %v1322_v20 = vpop.f32.mrb[12].mxu1 }
 0x2d7   : > { %v1546_v21 = vpop.f32.mrb[13].mxu1 }
 0x2d8   : > { %v1325_v22 = vpop.f32.mrb[14].mxu1 }
 0x2d9   : > { %v1547_v23 = vpop.f32.mrb[15].mxu1 }
 0x2e6   : > { %v1523_v24 = vpop.f32.mrb[12].mxu0 }
 0x2e7   : > { %v1524_v25 = vpop.f32.mrb[13].mxu0 }
 0x2e8   : > { %v1525_v26 = vadd.f32 %v1524_v25, %v1523_v24  ;;  %v1526_v27 = vpop.f32.mrb[14].mxu0 }
 0x2e9   : > { %v1527_v29 = vpop.f32.mrb[15].mxu0 }
 0x2ea   : > { %v1283_v30 = vadd.f32 %v1525_v26, %v1132_v17 }
 0x2ec   : > { %v1323_v31 = vadd.f32 %v1322_v20, %v1283_v30 }
 0x2ee   : > { %v1335_v34 = vadd.f32 %v1479_v33, %v1323_v31 }
 0x2f0   : > { %v1338_v35 = vmul.f32 %v1337_v32, %v1335_v34 }
 0x2f2   : > { %1339 = vst.msk [vmem:[%s344_s28] sm:$0xff] %vm404_vm1, %v1338_v35 }
 0x2f3 PF: > { %s19_s30 = sadd.s32 1, %s1676_s30  }
 0x2f4   : > { %p16_p4 = scmp.ge.s32.totalorder %s19_s30, 4  }
 0x2f6   :  { %18 = sbr.rel (!%p16_p4) target bundleno = 1 (0x1), region = 89 }

</bundles_post_ra>
